<compile_context>
chip_gen: v5e
topology: v5e:2x2
jax: 0.10.0
libtpu: 0.0.40
codegen_flags: <defaults>
</compile_context>

<pallas_src>
import functools

import jax
import jax.numpy as jnp
from jax import lax
from jax.experimental import pallas as pl
from jax.experimental.pallas import tpu as pltpu


def _round_up(x, m):
    return ((x + m - 1) // m) * m


def _cdiv(a, b):
    return (a + b - 1) // b


def _vmem_capacity_bytes():
    try:
        return int(pltpu.get_tpu_info().vmem_capacity_bytes)
    except Exception:
        return 64 * 1024 * 1024  # conservative fallback (v7x per-TC VMEM)


def _triplet_kernel(a_ref, p_ref, n_ref, o_ref, *,
                    margin, group, d_seg, tile, valid_rows):
    # Blocks are (tile, lanes); lanes = group * d_seg (128 when packed, else D).
    a = a_ref[...].astype(jnp.float32)
    p = p_ref[...].astype(jnp.float32)
    n = n_ref[...].astype(jnp.float32)

    # (a-p)^2 - (a-n)^2  ==  (n-p) * (2a - p - n)   (saves one VALU op; exact)
    diff = (n - p) * (2.0 * a - p - n)  # (tile, lanes) f32

    # Row-tail mask: rows past the real array extent contribute exactly 0.
    row_ids = pl.program_id(0) * tile + lax.broadcasted_iota(
        jnp.int32, (tile, 1), 0)
    row_valid = row_ids < valid_rows  # (tile, 1) bool

    if group > 1:
        lane_ids = lax.broadcasted_iota(jnp.int32, diff.shape, 1)

    total = jnp.zeros((1, 1), jnp.float32)
    for g in range(group):  # static unroll, group <= 4
        if group == 1:
            seg_diff = diff
        else:
            in_seg = (lane_ids >= g * d_seg) & (lane_ids < (g + 1) * d_seg)
            seg_diff = jnp.where(in_seg, diff, jnp.float32(0.0))
        # distance_positive - distance_negative per original row
        per_row = jnp.sum(seg_diff, axis=1, keepdims=True)            # (tile, 1)
        losses = jnp.maximum(per_row + jnp.float32(margin), 0.0)      # (tile, 1)
        losses = jnp.where(row_valid, losses, jnp.float32(0.0))       # mask tail
        total = total + jnp.sum(losses, axis=0, keepdims=True)        # (1, 1)

    # Lane-dense unmasked store of this tile's partial sum.
    o_ref[...] = jnp.broadcast_to(total.reshape(1, 1, 1), (1, 1, 128))


def triplet_loss(anchor, positive, negative, margin=0.2):
    """Pallas TripletLoss forward. Inputs: (B, D) float arrays. Returns scalar f32."""
    B, D = anchor.shape
    assert positive.shape == (B, D) and negative.shape == (B, D)
    dtype = anchor.dtype
    itemsize = jnp.dtype(dtype).itemsize
    row_align = max(8, 32 // itemsize)  # 8 for f32, 16 for bf16, 32 for int8/fp8

    # ---- free-reshape lane packing only (never pay a pad copy) ----
    if D < 128 and 128 % D == 0 and B % (128 // D) == 0:
        group = 128 // D          # original rows packed per 128-lane row
    else:
        group = 1
    d_seg = D
    lanes = group * d_seg
    rows = B // group             # exact by construction

    def pack(x):
        # Pure row-merging reshape (contiguous, no data movement).
        return x.reshape(rows, lanes) if group > 1 else x

    a, p, n = pack(anchor), pack(positive), pack(negative)

    # ---- tile size: target ~4 MiB per input buffer (6 buffers <= ~24 MiB) ----
    cap = _vmem_capacity_bytes()
    per_buf = min(4 << 20, max(cap // 16, 1 << 20))
    tile = per_buf // max(1, lanes * itemsize)
    tile = (tile // row_align) * row_align
    if rows > row_align:
        # >= 2 grid tiles so v7x megacore can split the stream across both TCs.
        tile = min(tile, _round_up(_cdiv(rows, 2), row_align))
    tile = min(tile, _round_up(rows, row_align))
    tile = max(tile, row_align)
    num_tiles = _cdiv(rows, tile)

    kernel = functools.partial(
        _triplet_kernel, margin=float(margin), group=group, d_seg=d_seg,
        tile=tile, valid_rows=rows)

    block = pl.BlockSpec((tile, lanes), lambda i: (i, 0))
    buf_bytes = 6 * tile * lanes * itemsize
    vmem_limit = int(min(max(buf_bytes + (8 << 20), 32 << 20), int(cap * 0.9)))

    out = pl.pallas_call(
        kernel,
        out_shape=jax.ShapeDtypeStruct((num_tiles, 1, 128), jnp.float32),
        grid_spec=pltpu.PrefetchScalarGridSpec(
            num_scalar_prefetch=0,
            grid=(num_tiles,),
            in_specs=[block, block, block],
            out_specs=pl.BlockSpec((1, 1, 128), lambda i: (i, 0, 0)),
        ),
        compiler_params=pltpu.CompilerParams(
            dimension_semantics=("parallel",),   # independent tiles; megacore on v7x
            vmem_limit_bytes=vmem_limit,
        ),
        cost_estimate=pl.CostEstimate(
            flops=6 * rows * lanes,
            transcendentals=0,
            bytes_accessed=3 * B * D * itemsize + num_tiles * 128 * 4,
        ),
    )(a, p, n)

    # Tiny final reduction + mean outside the kernel (losses.mean()).
    return jnp.sum(out[:, 0, 0]) / jnp.float32(B)


def triplet_loss_ref(anchor, positive, negative, margin=0.2):
    a = anchor.astype(jnp.float32)
    p = positive.astype(jnp.float32)
    n = negative.astype(jnp.float32)
    dp = jnp.sum((a - p) ** 2, axis=1)
    dn = jnp.sum((a - n) ** 2, axis=1)
    return jnp.mean(jnp.maximum(dp - dn + margin, 0.0))


if __name__ == "__main__":
    key = jax.random.PRNGKey(0)
    k_a, k_p, k_n = jax.random.split(key, 3)

    # Small FaceNet-style embedding batch (packed path, group == 4).
    B, D = 16, 32
    anchor = jax.random.normal(k_a, (B, D), dtype=jnp.float32)
    positive = jax.random.normal(k_p, (B, D), dtype=jnp.float32)
    negative = jax.random.normal(k_n, (B, D), dtype=jnp.float32)

    loss = triplet_loss(anchor, positive, negative, margin=0.2)
    loss = jax.block_until_ready(loss)
    ref = triplet_loss_ref(anchor, positive, negative, margin=0.2)
    assert jnp.allclose(loss, ref, atol=1e-5, rtol=1e-5), (loss, ref)

    # Non-divisible batch + D not a multiple of 128 (full-D block, row-mask tail).
    B2, D2 = 19, 96
    k1, k2, k3 = jax.random.split(jax.random.PRNGKey(1), 3)
    a2 = jax.random.normal(k1, (B2, D2), dtype=jnp.float32)
    p2 = jax.random.normal(k2, (B2, D2), dtype=jnp.float32)
    n2 = jax.random.normal(k3, (B2, D2), dtype=jnp.float32)
    l2 = jax.block_until_ready(triplet_loss(a2, p2, n2, margin=0.2))
    r2 = triplet_loss_ref(a2, p2, n2, margin=0.2)
    assert jnp.allclose(l2, r2, atol=1e-4, rtol=1e-5), (l2, r2)

    # Packing would apply (D=64) but B is odd -> unpacked full-D path, 2 tiles.
    B3, D3 = 21, 64
    k4, k5, k6 = jax.random.split(jax.random.PRNGKey(2), 3)
    a3 = jax.random.normal(k4, (B3, D3), dtype=jnp.float32)
    p3 = jax.random.normal(k5, (B3, D3), dtype=jnp.float32)
    n3 = jax.random.normal(k6, (B3, D3), dtype=jnp.float32)
    l3 = jax.block_until_ready(triplet_loss(a3, p3, n3, margin=0.2))
    r3 = triplet_loss_ref(a3, p3, n3, margin=0.2)
    assert jnp.allclose(l3, r3, atol=1e-4, rtol=1e-5), (l3, r3)

    # bf16 inputs (16-row sublane alignment, packed free reshape).
    B4, D4 = 40, 32
    k7, k8, k9 = jax.random.split(jax.random.PRNGKey(3), 3)
    a4 = jax.random.normal(k7, (B4, D4), dtype=jnp.bfloat16)
    p4 = jax.random.normal(k8, (B4, D4), dtype=jnp.bfloat16)
    n4 = jax.random.normal(k9, (B4, D4), dtype=jnp.bfloat16)
    l4 = jax.block_until_ready(triplet_loss(a4, p4, n4, margin=0.2))
    r4 = triplet_loss_ref(a4, p4, n4, margin=0.2)
    assert jnp.allclose(l4, r4, atol=1e-3, rtol=1e-3), (l4, r4)

    print("KERNEL_OK")
</pallas_src>

<mosaic_0001>
module attributes {stable_mosaic.version = 11 : i64} {
  func.func @_triplet_kernel(%arg0: i32, %arg1: memref<8x128xf32, #tpu.memory_space<vmem>>, %arg2: memref<8x128xf32, #tpu.memory_space<vmem>>, %arg3: memref<8x128xf32, #tpu.memory_space<vmem>>, %arg4: memref<1x1x128xf32, #tpu.memory_space<vmem>>) attributes {dimension_semantics = [#tpu.dimension_semantics<parallel>], iteration_bounds = array<i64: 1>, scalar_prefetch = 0 : i64, scratch_operands = 0 : i64, tpu.core_type = #tpu.core_type<tc>, window_params = [{transform_indices = @transform_0, window_bounds = array<i64: 8, 128>}, {transform_indices = @transform_1, window_bounds = array<i64: 8, 128>}, {transform_indices = @transform_2, window_bounds = array<i64: 8, 128>}, {transform_indices = @transform_3, window_bounds = array<i64: 1, 1, 128>}]} {
    %c0 = arith.constant 0 : index
    %c0_0 = arith.constant 0 : index
    %0 = vector.load %arg1[%c0, %c0_0] : memref<8x128xf32, #tpu.memory_space<vmem>>, vector<8x128xf32>
    %c0_1 = arith.constant 0 : index
    %c0_2 = arith.constant 0 : index
    %1 = vector.load %arg2[%c0_1, %c0_2] : memref<8x128xf32, #tpu.memory_space<vmem>>, vector<8x128xf32>
    %c0_3 = arith.constant 0 : index
    %c0_4 = arith.constant 0 : index
    %2 = vector.load %arg3[%c0_3, %c0_4] : memref<8x128xf32, #tpu.memory_space<vmem>>, vector<8x128xf32>
    %3 = arith.subf %2, %1 : vector<8x128xf32>
    %cst = arith.constant 2.000000e+00 : f32
    %4 = vector.broadcast %cst : f32 to vector<8x128xf32>
    %5 = arith.mulf %4, %0 : vector<8x128xf32>
    %6 = arith.subf %5, %1 : vector<8x128xf32>
    %7 = arith.subf %6, %2 : vector<8x128xf32>
    %8 = arith.mulf %3, %7 : vector<8x128xf32>
    %c8_i32 = arith.constant 8 : i32
    %9 = arith.muli %arg0, %c8_i32 : i32
    %10 = tpu.iota {dimensions = array<i32: 0>} : vector<8x1xi32>
    %11 = vector.broadcast %9 : i32 to vector<8x1xi32>
    %12 = arith.addi %11, %10 : vector<8x1xi32>
    %c4_i32 = arith.constant 4 : i32
    %13 = vector.broadcast %c4_i32 : i32 to vector<8x1xi32>
    %14 = arith.cmpi slt, %12, %13 : vector<8x1xi32>
    %15 = tpu.iota {dimensions = array<i32: 1>} : vector<8x128xi32>
    %cst_5 = arith.constant 0.000000e+00 : f32
    %16 = vector.broadcast %cst_5 : f32 to vector<1x1xf32>
    %c0_i32 = arith.constant 0 : i32
    %17 = vector.broadcast %c0_i32 : i32 to vector<8x128xi32>
    %18 = arith.cmpi sge, %15, %17 : vector<8x128xi32>
    %c32_i32 = arith.constant 32 : i32
    %19 = vector.broadcast %c32_i32 : i32 to vector<8x128xi32>
    %20 = arith.cmpi slt, %15, %19 : vector<8x128xi32>
    %21 = arith.andi %18, %20 : vector<8x128xi1>
    %cst_6 = arith.constant 0.000000e+00 : f32
    %22 = vector.broadcast %cst_6 : f32 to vector<8x128xf32>
    %23 = arith.select %21, %8, %22 : vector<8x128xi1>, vector<8x128xf32>
    %cst_7 = arith.constant dense<0.000000e+00> : vector<8xf32>
    %24 = vector.multi_reduction <add>, %23, %cst_7 [1] : vector<8x128xf32> to vector<8xf32>
    %25 = vector.shape_cast %24 : vector<8xf32> to vector<8x1xf32>
    %cst_8 = arith.constant 2.000000e-01 : f32
    %26 = vector.broadcast %cst_8 : f32 to vector<8x1xf32>
    %27 = arith.addf %25, %26 : vector<8x1xf32>
    %cst_9 = arith.constant 0.000000e+00 : f32
    %28 = vector.broadcast %cst_9 : f32 to vector<8x1xf32>
    %29 = arith.maximumf %27, %28 : vector<8x1xf32>
    %cst_10 = arith.constant 0.000000e+00 : f32
    %30 = vector.broadcast %cst_10 : f32 to vector<8x1xf32>
    %31 = arith.select %14, %29, %30 : vector<8x1xi1>, vector<8x1xf32>
    %cst_11 = arith.constant dense<0.000000e+00> : vector<1xf32>
    %32 = vector.multi_reduction <add>, %31, %cst_11 [0] : vector<8x1xf32> to vector<1xf32>
    %33 = vector.shape_cast %32 : vector<1xf32> to vector<1x1xf32>
    %34 = arith.addf %16, %33 : vector<1x1xf32>
    %c32_i32_12 = arith.constant 32 : i32
    %35 = vector.broadcast %c32_i32_12 : i32 to vector<8x128xi32>
    %36 = arith.cmpi sge, %15, %35 : vector<8x128xi32>
    %c64_i32 = arith.constant 64 : i32
    %37 = vector.broadcast %c64_i32 : i32 to vector<8x128xi32>
    %38 = arith.cmpi slt, %15, %37 : vector<8x128xi32>
    %39 = arith.andi %36, %38 : vector<8x128xi1>
    %cst_13 = arith.constant 0.000000e+00 : f32
    %40 = vector.broadcast %cst_13 : f32 to vector<8x128xf32>
    %41 = arith.select %39, %8, %40 : vector<8x128xi1>, vector<8x128xf32>
    %cst_14 = arith.constant dense<0.000000e+00> : vector<8xf32>
    %42 = vector.multi_reduction <add>, %41, %cst_14 [1] : vector<8x128xf32> to vector<8xf32>
    %43 = vector.shape_cast %42 : vector<8xf32> to vector<8x1xf32>
    %cst_15 = arith.constant 2.000000e-01 : f32
    %44 = vector.broadcast %cst_15 : f32 to vector<8x1xf32>
    %45 = arith.addf %43, %44 : vector<8x1xf32>
    %cst_16 = arith.constant 0.000000e+00 : f32
    %46 = vector.broadcast %cst_16 : f32 to vector<8x1xf32>
    %47 = arith.maximumf %45, %46 : vector<8x1xf32>
    %cst_17 = arith.constant 0.000000e+00 : f32
    %48 = vector.broadcast %cst_17 : f32 to vector<8x1xf32>
    %49 = arith.select %14, %47, %48 : vector<8x1xi1>, vector<8x1xf32>
    %cst_18 = arith.constant dense<0.000000e+00> : vector<1xf32>
    %50 = vector.multi_reduction <add>, %49, %cst_18 [0] : vector<8x1xf32> to vector<1xf32>
    %51 = vector.shape_cast %50 : vector<1xf32> to vector<1x1xf32>
    %52 = arith.addf %34, %51 : vector<1x1xf32>
    %c64_i32_19 = arith.constant 64 : i32
    %53 = vector.broadcast %c64_i32_19 : i32 to vector<8x128xi32>
    %54 = arith.cmpi sge, %15, %53 : vector<8x128xi32>
    %c96_i32 = arith.constant 96 : i32
    %55 = vector.broadcast %c96_i32 : i32 to vector<8x128xi32>
    %56 = arith.cmpi slt, %15, %55 : vector<8x128xi32>
    %57 = arith.andi %54, %56 : vector<8x128xi1>
    %cst_20 = arith.constant 0.000000e+00 : f32
    %58 = vector.broadcast %cst_20 : f32 to vector<8x128xf32>
    %59 = arith.select %57, %8, %58 : vector<8x128xi1>, vector<8x128xf32>
    %cst_21 = arith.constant dense<0.000000e+00> : vector<8xf32>
    %60 = vector.multi_reduction <add>, %59, %cst_21 [1] : vector<8x128xf32> to vector<8xf32>
    %61 = vector.shape_cast %60 : vector<8xf32> to vector<8x1xf32>
    %cst_22 = arith.constant 2.000000e-01 : f32
    %62 = vector.broadcast %cst_22 : f32 to vector<8x1xf32>
    %63 = arith.addf %61, %62 : vector<8x1xf32>
    %cst_23 = arith.constant 0.000000e+00 : f32
    %64 = vector.broadcast %cst_23 : f32 to vector<8x1xf32>
    %65 = arith.maximumf %63, %64 : vector<8x1xf32>
    %cst_24 = arith.constant 0.000000e+00 : f32
    %66 = vector.broadcast %cst_24 : f32 to vector<8x1xf32>
    %67 = arith.select %14, %65, %66 : vector<8x1xi1>, vector<8x1xf32>
    %cst_25 = arith.constant dense<0.000000e+00> : vector<1xf32>
    %68 = vector.multi_reduction <add>, %67, %cst_25 [0] : vector<8x1xf32> to vector<1xf32>
    %69 = vector.shape_cast %68 : vector<1xf32> to vector<1x1xf32>
    %70 = arith.addf %52, %69 : vector<1x1xf32>
    %c96_i32_26 = arith.constant 96 : i32
    %71 = vector.broadcast %c96_i32_26 : i32 to vector<8x128xi32>
    %72 = arith.cmpi sge, %15, %71 : vector<8x128xi32>
    %c128_i32 = arith.constant 128 : i32
    %73 = vector.broadcast %c128_i32 : i32 to vector<8x128xi32>
    %74 = arith.cmpi slt, %15, %73 : vector<8x128xi32>
    %75 = arith.andi %72, %74 : vector<8x128xi1>
    %cst_27 = arith.constant 0.000000e+00 : f32
    %76 = vector.broadcast %cst_27 : f32 to vector<8x128xf32>
    %77 = arith.select %75, %8, %76 : vector<8x128xi1>, vector<8x128xf32>
    %cst_28 = arith.constant dense<0.000000e+00> : vector<8xf32>
    %78 = vector.multi_reduction <add>, %77, %cst_28 [1] : vector<8x128xf32> to vector<8xf32>
    %79 = vector.shape_cast %78 : vector<8xf32> to vector<8x1xf32>
    %cst_29 = arith.constant 2.000000e-01 : f32
    %80 = vector.broadcast %cst_29 : f32 to vector<8x1xf32>
    %81 = arith.addf %79, %80 : vector<8x1xf32>
    %cst_30 = arith.constant 0.000000e+00 : f32
    %82 = vector.broadcast %cst_30 : f32 to vector<8x1xf32>
    %83 = arith.maximumf %81, %82 : vector<8x1xf32>
    %cst_31 = arith.constant 0.000000e+00 : f32
    %84 = vector.broadcast %cst_31 : f32 to vector<8x1xf32>
    %85 = arith.select %14, %83, %84 : vector<8x1xi1>, vector<8x1xf32>
    %cst_32 = arith.constant dense<0.000000e+00> : vector<1xf32>
    %86 = vector.multi_reduction <add>, %85, %cst_32 [0] : vector<8x1xf32> to vector<1xf32>
    %87 = vector.shape_cast %86 : vector<1xf32> to vector<1x1xf32>
    %88 = arith.addf %70, %87 : vector<1x1xf32>
    %89 = vector.shape_cast %88 : vector<1x1xf32> to vector<1x1x1xf32>
    %90 = vector.shape_cast %89 : vector<1x1x1xf32> to vector<1x1x1xf32>
    %91 = vector.broadcast %90 : vector<1x1x1xf32> to vector<1x1x128xf32>
    %c0_33 = arith.constant 0 : index
    %c0_34 = arith.constant 0 : index
    %c0_35 = arith.constant 0 : index
    %92 = vector.load %arg4[%c0_33, %c0_34, %c0_35] : memref<1x1x128xf32, #tpu.memory_space<vmem>>, vector<1x1x128xf32>
    tpu.vector_store %arg4[%c0_33, %c0_34, %c0_35], %91 {strides = array<i32>} : memref<1x1x128xf32, #tpu.memory_space<vmem>>, vector<1x1x128xf32>,
    return
  }
  func.func @transform_0(%arg0: i32) -> (i32, i32) {
    %c0_i32 = arith.constant 0 : i32
    %c0_i32_0 = arith.constant 0 : i32
    return %arg0, %c0_i32 : i32, i32
  }
  func.func @transform_1(%arg0: i32) -> (i32, i32) {
    %c0_i32 = arith.constant 0 : i32
    %c0_i32_0 = arith.constant 0 : i32
    return %arg0, %c0_i32 : i32, i32
  }
  func.func @transform_2(%arg0: i32) -> (i32, i32) {
    %c0_i32 = arith.constant 0 : i32
    %c0_i32_0 = arith.constant 0 : i32
    return %arg0, %c0_i32 : i32, i32
  }
  func.func @transform_3(%arg0: i32) -> (i32, i32, i32) {
    %c0_i32 = arith.constant 0 : i32
    %c0_i32_0 = arith.constant 0 : i32
    %c0_i32_1 = arith.constant 0 : i32
    return %arg0, %c0_i32, %c0_i32_0 : i32, i32, i32
  }
}

</mosaic_0001>

<bundles_post_ra>
// kernel: tpu_custom_call.1
= control target key start
LH: loop header
LB: loop body
LE: loop exit
PB: predicated region body
PF: predicated region fallthrough
CT: control target
= control target key end

     0   :  { %8 = vsyncpa [#allocation3], 0  ;;  %s311_s0 = inlined_call_operand.hbm [shape: f32[4,128], index: 0, kind: input, shape index: {}]   ;;  %s312_s1 = inlined_call_operand.hbm [shape: f32[4,128], index: 1, kind: input, shape index: {}]   ;;  %s313_s2 = inlined_call_operand.hbm [shape: f32[4,128], index: 2, kind: input, shape index: {}]   ;;  %s314_s3 = inlined_call_operand.hbm [shape: f32[1,1,128], index: 3, kind: output, shape index: {}]  }
   0x1   :  { %9 = vsyncpa [#allocation6], 0 }
   0x2   :  { %10 = vsyncpa [#allocation4], 0 }
   0x3   :  { %14 = vsyncadd [#allocation3], 64  ;;  %s15_s14 = sshll.u32 %s311_s0, 4  ;;  %s269_s15 = smov [#allocation2]   ;;  %s16_s14 = int_to_ptr.hbm [resolvable:$true] %s15_s14 }
   0x4   :  { %s17_s16 = sshll.u32 %s269_s15, 4  ;;  %s270_s17 = smov 64   ;;  %s18_s16 = int_to_ptr.vmem [resolvable:$true] %s17_s16 }
   0x5   :  { %s271_s18 = smov 4  }
   0x6   :  { %23 = dma.hbm_to_vmem [thread:$0]  %s16_s14, 64, %s18_s16, [#allocation3], %s270_s17, %s270_s17, %s271_s18  }
   0x7   :  { %27 = vsyncadd [#allocation6], 64  ;;  %s28_s21 = sshll.u32 %s312_s1, 4  ;;  %s272_s22 = smov [#allocation5]   ;;  %s29_s21 = int_to_ptr.hbm [resolvable:$true] %s28_s21 }
   0x8   :  { %s30_s23 = sshll.u32 %s272_s22, 4  ;;  %s31_s23 = int_to_ptr.vmem [resolvable:$true] %s30_s23 }
   0x9   :  { %36 = dma.hbm_to_vmem [thread:$0]  %s29_s21, 64, %s31_s23, [#allocation6], %s270_s17, %s270_s17, %s271_s18  }
   0xa   :  { %40 = vsyncadd [#allocation6], 64  ;;  %s41_s25 = sshll.u32 %s313_s2, 4  ;;  %s273_s26 = smov [#allocation7]   ;;  %s42_s25 = int_to_ptr.hbm [resolvable:$true] %s41_s25 }
   0xb   :  { %s43_s27 = sshll.u32 %s273_s26, 4  ;;  %s44_s27 = int_to_ptr.vmem [resolvable:$true] %s43_s27 }
   0xc   :  { %49 = dma.hbm_to_vmem [thread:$0]  %s42_s25, 64, %s44_s27, [#allocation6], %s270_s17, %s270_s17, %s271_s18  }
   0xd   :  { %263 = dma.done.wait [#allocation3], 128  }
   0xe   :  { %264 = vsyncadd [#allocation3], 4294967168 }
   0xf   :  { %265 = dma.done.wait [#allocation6], 256  }
  0x10   :  { %266 = vsyncadd [#allocation6], 4294967040  ;;  %v71_v0 = vlaneseq  ;;  %v62_v2 = vld [vmem:[#allocation2] sm:$0xff]  ;;  %v63_v3 = vld [vmem:[#allocation5] sm:$0xff]  ;;  %s274_s1 = smov [#allocation8]   ;;  %s150_s30 = sshll.u32 %s314_s3, 4  ;;  %s151_s30 = int_to_ptr.hbm [resolvable:$true] %s150_s30 }
  0x11   :  { %v64_v4 = vld [vmem:[#allocation7] sm:$0xff]  ;;  %v66_v5 = vmul.f32 2.0, %v62_v2  ;;  %s148_s2 = sshll.u32 %s274_s1, 4  ;;  %s149_s2 = int_to_ptr.vmem [resolvable:$true] %s148_s2 }
  0x12   :  { %v77_v1 = vand.u32 127, %v71_v0  ;;  %v65_v6 = vsub.f32 %v64_v4, %v63_v3  ;;  %v72_v14 = vshrl.u32 %v71_v0, 7 }
  0x13   :  { %v67_v7 = vsub.f32 %v66_v5, %v63_v3 }
  0x14   :  { %vm110_vm0 = vcmp.ge.s32.totalorder %v77_v1, 64  ;;  %vm111_vm1 = vcmp.lt.s32.totalorder %v77_v1, 96  ;;  %vm79_vm3 = vcmp.lt.s32.totalorder %v77_v1, 32  ;;  %vm94_vm4 = vcmp.ge.s32.totalorder %v77_v1, 32 }
  0x15   :  { %v68_v8 = vsub.f32 %v67_v7, %v64_v4  ;;  %vm112_vm2 = vmand %vm110_vm0, %vm111_vm1  ;;  %vm95_vm5 = vcmp.lt.s32.totalorder %v77_v1, 64  ;;  %vm126_vm6 = vcmp.ge.s32.totalorder %v77_v1, 96  ;;  %vm75_vm8 = vcmp.lt.s32.totalorder %v72_v14, 4 }
  0x16   :  { %vm96_vm7 = vmand %vm94_vm4, %vm95_vm5 }
  0x17   :  { %v69_v9 = vmul.f32 %v68_v8, %v65_v6 }
  0x19   :  { %v113_v10 = vsel %vm112_vm2, %v69_v9, 0.0  ;;  %v81_v11 = vsel %vm79_vm3, %v69_v9, 0.0  ;;  %v129_v12 = vsel %vm126_vm6, %v69_v9, 0.0  ;;  %v97_v13 = vsel %vm96_vm7, %v69_v9, 0.0 }
  0x1a   :  { %114 = vadd.xlane.f32.xlu1 %v113_v10  ;;  %82 = vadd.xlane.f32.xlu0 %v81_v11 }
  0x22   :  { %130 = vadd.xlane.f32.xlu1 %v129_v12  ;;  %98 = vadd.xlane.f32.xlu0 %v97_v13 }
  0x8d   :  { %v115_v15 = vpop.xlane.xlu1 %114  ;;  %v83_v16 = vpop.xlane.xlu0 %82 }
  0x8e   :  { %v116_v17 = vadd.f32 0.2, %v115_v15  ;;  %v84_v18 = vadd.f32 0.2, %v83_v16 }
  0x90   :  { %v117_v19 = vmax.f32 %v116_v17, 0.0  ;;  %v85_v20 = vmax.f32 %v84_v18, 0.0 }
  0x92   :  { %v118_v21 = vsel %vm75_vm8, %v117_v19, 0.0  ;;  %v86_v22 = vsel %vm75_vm8, %v85_v20, 0.0 }
  0x93   :  { %v119_v23 = vrot.slane %v118_v21, 4  ;;  %v87_v24 = vrot.slane %v86_v22, 4 }
  0x95   :  { %v88_v25 = vadd.f32 %v87_v24, %v86_v22  ;;  %v131_v26 = vpop.xlane.xlu1 %130  ;;  %v99_v27 = vpop.xlane.xlu0 %98  ;;  %v120_v30 = vadd.f32 %v119_v23, %v118_v21 }
  0x96   :  { %v132_v28 = vadd.f32 0.2, %v131_v26  ;;  %v100_v29 = vadd.f32 0.2, %v99_v27 }
  0x97   :  { %v89_v33 = vrot.slane %v88_v25, 2  ;;  %v121_v36 = vrot.slane %v120_v30, 2 }
  0x98   :  { %v133_v31 = vmax.f32 %v132_v28, 0.0  ;;  %v101_v32 = vmax.f32 %v100_v29, 0.0 }
  0x99   :  { %v90_v39 = vadd.f32 %v89_v33, %v88_v25  ;;  %v122_v42 = vadd.f32 %v121_v36, %v120_v30 }
  0x9a   :  { %v134_v34 = vsel %vm75_vm8, %v133_v31, 0.0  ;;  %v102_v35 = vsel %vm75_vm8, %v101_v32, 0.0 }
  0x9b   :  { %v135_v37 = vrot.slane %v134_v34, 4  ;;  %v103_v38 = vrot.slane %v102_v35, 4  ;;  %v91_v45 = vrot.slane %v90_v39, 1  ;;  %v123_v48 = vrot.slane %v122_v42, 1 }
  0x9d   :  { %v136_v40 = vadd.f32 %v135_v37, %v134_v34  ;;  %v104_v41 = vadd.f32 %v103_v38, %v102_v35  ;;  %v92_v50 = vadd.f32 %v91_v45, %v90_v39  ;;  %v124_v53 = vadd.f32 %v123_v48, %v122_v42 }
  0x9f   :  { %v137_v43 = vrot.slane %v136_v40, 2  ;;  %v105_v44 = vrot.slane %v104_v41, 2 }
  0xa1   :  { %v138_v46 = vadd.f32 %v137_v43, %v136_v40  ;;  %v106_v47 = vadd.f32 %v105_v44, %v104_v41 }
  0xa3   :  { %v107_v49 = vrot.slane %v106_v47, 1  ;;  %v139_v51 = vrot.slane %v138_v46, 1 }
  0xa5   :  { %v108_v52 = vadd.f32 %v107_v49, %v106_v47  ;;  %v140_v55 = vadd.f32 %v139_v51, %v138_v46 }
  0xa7   :  { %v109_v54 = vadd.f32 %v108_v52, %v92_v50 }
  0xa9   :  { %v125_v56 = vadd.f32 %v124_v53, %v109_v54 }
  0xab   :  { %v141_v57 = vadd.f32 %v140_v55, %v125_v56 }
  0xad   :  { %142 = vst [vmem:[#allocation8] sm:$0x1] %v141_v57 }
  0xae   :  { %153 = dma.vmem_to_hbm [thread:$0]  %s149_s2, 16, %s151_s30, [#allocation4]  }
  0xaf   :  { %267 = dma.done.wait [#allocation4], 16  }
  0xb0   :  { %268 = vsyncadd [#allocation4], 4294967280 }
  0xb1   :  { %158 = vsyncpa [#allocation3], 1 }
  0xb2   :  { %159 = vsyncpa [#allocation6], 1 }
  0xb3   :  { %160 = vsyncpa [#allocation4], 1 }

</bundles_post_ra>
